<compile_context>
chip_gen: v7x
topology: tpu7x:2x2x1
jax: 0.10.0
libtpu: 0.0.40
codegen_flags: <defaults>
</compile_context>

<pallas_src>
import jax
import jax.numpy as jnp
from jax.experimental import pallas as pl
from jax.experimental.pallas import tpu as pltpu

HIDDEN_DIM = 16
NEG_SLOPE = 0.01                    # torch.nn.functional.leaky_relu default
HALF_P = 0.5 * (1.0 + NEG_SLOPE)    # 0.505
HALF_M = 0.5 * (1.0 - NEG_SLOPE)    # 0.495
LANES = 128


def _secondnet_kernel(ab_ref, d_ref, e_ref, x_ref, o_ref):
    """ab_ref: (2,) f32 SMEM = [A, B].
    d_ref/e_ref: (16, 128) VMEM rows in the compute dtype (lane-broadcast).
    x_ref/o_ref: lane-dense (tile_r, 128) f32 tiles."""
    x32 = x_ref[...]                              # f32
    xc = x32.astype(d_ref.dtype)                  # compute dtype (f32 or bf16)

    # Fully-unrolled abs-sum: add / abs / mul-acc per hidden unit, pure VPU.
    acc = d_ref[0] * jnp.abs(xc + e_ref[0])
    for j in range(1, HIDDEN_DIM):
        acc = acc + d_ref[j] * jnp.abs(xc + e_ref[j])

    # f32 epilogue: linear part + sigmoid (exp + exact reciprocal on the EUP).
    y = ab_ref[0] * x32 + (acc.astype(jnp.float32) + ab_ref[1])
    o_ref[...] = pl.reciprocal(1.0 + jnp.exp(-y), approx=False).astype(o_ref.dtype)


def secondnet_forward(x, w1, b1, w2, b2, *, tile_rows=1024,
                      compute_dtype=jnp.float32):
    """x: (B, 1); w1, b1, w2: (16,)-like; b2: (1,)-like.  Returns (B, 1) f32.

    compute_dtype=jnp.bfloat16 doubles VALU throughput on v6e/v7x at the cost
    of ~1e-2-level absolute error on the output probability; keep f32 on v5e
    or when tight accuracy is required.
    """
    orig_shape = x.shape
    xf = x.reshape(-1).astype(jnp.float32)
    n = xf.shape[0]

    # ---- Fold Linear(1,16) + leaky_relu + Linear(16,1) into
    #         y = A*x + B + sum_j d[j]*|x + e[j]|
    w1f = jnp.asarray(w1, jnp.float32).reshape(-1)
    b1f = jnp.asarray(b1, jnp.float32).reshape(-1)
    w2f = jnp.asarray(w2, jnp.float32).reshape(-1)
    b2f = jnp.asarray(b2, jnp.float32).reshape(-1)
    nz = w1f != 0.0                                    # guard degenerate units
    A = HALF_P * jnp.sum(w2f * w1f)
    B = (HALF_P * jnp.sum(w2f * b1f)
         + HALF_M * jnp.sum(jnp.where(nz, 0.0, w2f * jnp.abs(b1f)))
         + b2f[0])
    d = jnp.where(nz, HALF_M * w2f * jnp.abs(w1f), 0.0)
    e = jnp.where(nz, b1f / jnp.where(nz, w1f, 1.0), 0.0)
    ab = jnp.stack([A, B])                                           # (2,) f32
    d_rows = jnp.broadcast_to(d.astype(compute_dtype)[:, None],
                              (HIDDEN_DIM, LANES))
    e_rows = jnp.broadcast_to(e.astype(compute_dtype)[:, None],
                              (HIDDEN_DIM, LANES))

    # ---- Lane-dense view, padded only to the (8, 128) alignment.
    rows = pl.cdiv(n, LANES)
    rows8 = pl.cdiv(rows, 8) * 8
    pad = rows8 * LANES - n
    if pad:
        xf = jnp.pad(xf, (0, pad))
    x2d = xf.reshape(rows8, LANES)

    # ---- Row tiling: large tiles, but >= 2 grid steps when the batch is big
    # enough, so ("parallel",) can shard across both TensorCores on v7x.
    tile_rows = max(8, (int(tile_rows) // 8) * 8)
    half8 = pl.cdiv(pl.cdiv(rows8, 2), 8) * 8
    tile_r = max(8, min(tile_rows, max(256, half8), rows8))
    grid = (pl.cdiv(rows8, tile_r),)      # last block may be ragged (masked)

    out2d = pl.pallas_call(
        _secondnet_kernel,
        out_shape=jax.ShapeDtypeStruct((rows8, LANES), jnp.float32),
        grid=grid,
        in_specs=[
            pl.BlockSpec(memory_space=pltpu.MemorySpace.SMEM),            # A, B
            pl.BlockSpec((HIDDEN_DIM, LANES), lambda i: (0, 0)),          # d rows
            pl.BlockSpec((HIDDEN_DIM, LANES), lambda i: (0, 0)),          # e rows
            pl.BlockSpec((tile_r, LANES), lambda i: (i, 0)),              # x tiles
        ],
        out_specs=pl.BlockSpec((tile_r, LANES), lambda i: (i, 0)),
        compiler_params=pltpu.CompilerParams(
            dimension_semantics=("parallel",)),
    )(ab, d_rows, e_rows, x2d)

    # Restore (B, 1).  When the batch is already 8*128-aligned both the pad
    # and the tail slice vanish; for a fully fused path the caller can consume
    # the lane-dense (rows8, 128) buffer directly.
    out_flat = out2d.reshape(-1)
    if pad:
        out_flat = out_flat[:n]
    return out_flat.reshape(orig_shape)


def init_params(key):
    """Matches nn.Linear's U(-1/sqrt(fan_in), 1/sqrt(fan_in)) init, stored flat."""
    k1, k2, k3, k4 = jax.random.split(key, 4)
    bound1 = 1.0                                    # fan_in = 1
    bound2 = 1.0 / jnp.sqrt(float(HIDDEN_DIM))      # fan_in = 16
    w1 = jax.random.uniform(k1, (HIDDEN_DIM,), jnp.float32, -bound1, bound1)
    b1 = jax.random.uniform(k2, (HIDDEN_DIM,), jnp.float32, -bound1, bound1)
    w2 = jax.random.uniform(k3, (HIDDEN_DIM,), jnp.float32, -bound2, bound2)
    b2 = jax.random.uniform(k4, (1,), jnp.float32, -bound2, bound2)
    return w1, b1, w2, b2


def reference_forward(x, w1, b1, w2, b2):
    h = x * w1[None, :] + b1[None, :]                              # (B, 16)
    h = jnp.where(h > 0, h, NEG_SLOPE * h)                         # leaky_relu
    y = jnp.sum(h * w2[None, :], axis=-1, keepdims=True) + b2[0]   # (B, 1)
    return jax.nn.sigmoid(y)


if __name__ == "__main__":
    key = jax.random.PRNGKey(0)
    k_x, k_p = jax.random.split(key)
    w1, b1, w2, b2 = init_params(k_p)

    # 1) Small batch: lane padding + tail slicing, single tile, f32 compute.
    B = 300
    x = jax.random.normal(k_x, (B, 1), jnp.float32)
    out = jax.block_until_ready(secondnet_forward(x, w1, b1, w2, b2))
    ref = reference_forward(x, w1, b1, w2, b2)
    assert out.shape == (B, 1)
    assert jnp.allclose(out, ref, atol=2e-3, rtol=2e-3), float(
        jnp.max(jnp.abs(out - ref)))

    # 2) Multi-tile grid with production-size (>=256 row) tiles and a ragged
    #    last block: rows8 = 320 -> tile_r = 256, grid = (2,).
    B2 = 40000
    x2 = jax.random.normal(k_x, (B2, 1), jnp.float32)
    out2 = jax.block_until_ready(secondnet_forward(x2, w1, b1, w2, b2))
    ref2 = reference_forward(x2, w1, b1, w2, b2)
    assert out2.shape == (B2, 1)
    assert jnp.allclose(out2, ref2, atol=2e-3, rtol=2e-3), float(
        jnp.max(jnp.abs(out2 - ref2)))

    # 3) bf16 compute path (v6e/v7x optimization), aligned batch (no pad/slice).
    #    Looser tolerance: the 16-term abs-sum accumulates in bf16.
    B3 = 1024
    x3 = jax.random.normal(k_x, (B3, 1), jnp.float32)
    out3 = jax.block_until_ready(
        secondnet_forward(x3, w1, b1, w2, b2, compute_dtype=jnp.bfloat16))
    ref3 = reference_forward(x3, w1, b1, w2, b2)
    assert out3.shape == (B3, 1)
    assert jnp.allclose(out3, ref3, atol=4e-2, rtol=0.0), float(
        jnp.max(jnp.abs(out3 - ref3)))

    print("KERNEL_OK")
</pallas_src>

<mosaic_0001>
module attributes {stable_mosaic.version = 11 : i64} {
  func.func @_secondnet_kernel(%arg0: i32, %arg1: memref<2xf32, #tpu.memory_space<smem>>, %arg2: memref<16x128xf32, #tpu.memory_space<vmem>>, %arg3: memref<16x128xf32, #tpu.memory_space<vmem>>, %arg4: memref<8x128xf32, #tpu.memory_space<vmem>>, %arg5: memref<8x128xf32, #tpu.memory_space<vmem>>) attributes {dimension_semantics = [#tpu.dimension_semantics<parallel>], iteration_bounds = array<i64: 1>, scalar_prefetch = 0 : i64, scratch_operands = 0 : i64, tpu.core_type = #tpu.core_type<tc>, window_params = [{transform_indices = @transform_0, window_bounds = array<i64: 2>}, {pipeline_mode = #tpu.pipeline_mode<synchronous>, transform_indices = @transform_1, window_bounds = array<i64: 16, 128>}, {pipeline_mode = #tpu.pipeline_mode<synchronous>, transform_indices = @transform_2, window_bounds = array<i64: 16, 128>}, {transform_indices = @transform_3, window_bounds = array<i64: 8, 128>}, {transform_indices = @transform_4, window_bounds = array<i64: 8, 128>}]} {
    %c0 = arith.constant 0 : index
    %c0_0 = arith.constant 0 : index
    %0 = vector.load %arg4[%c0, %c0_0] : memref<8x128xf32, #tpu.memory_space<vmem>>, vector<8x128xf32>
    %c0_1 = arith.constant 0 : index
    %c0_2 = arith.constant 0 : index
    %1 = vector.load %arg2[%c0_1, %c0_2] : memref<16x128xf32, #tpu.memory_space<vmem>>, vector<1x128xf32>
    %2 = vector.shape_cast %1 : vector<1x128xf32> to vector<128xf32>
    %c0_3 = arith.constant 0 : index
    %c0_4 = arith.constant 0 : index
    %3 = vector.load %arg3[%c0_3, %c0_4] : memref<16x128xf32, #tpu.memory_space<vmem>>, vector<1x128xf32>
    %4 = vector.shape_cast %3 : vector<1x128xf32> to vector<128xf32>
    %5 = vector.shape_cast %4 : vector<128xf32> to vector<1x128xf32>
    %6 = vector.broadcast %5 : vector<1x128xf32> to vector<8x128xf32>
    %7 = arith.addf %0, %6 : vector<8x128xf32>
    %8 = math.absf %7 : vector<8x128xf32>
    %9 = vector.shape_cast %2 : vector<128xf32> to vector<1x128xf32>
    %10 = vector.broadcast %9 : vector<1x128xf32> to vector<8x128xf32>
    %11 = arith.mulf %10, %8 : vector<8x128xf32>
    %c1 = arith.constant 1 : index
    %c0_5 = arith.constant 0 : index
    %12 = vector.load %arg2[%c1, %c0_5] : memref<16x128xf32, #tpu.memory_space<vmem>>, vector<1x128xf32>
    %13 = vector.shape_cast %12 : vector<1x128xf32> to vector<128xf32>
    %c1_6 = arith.constant 1 : index
    %c0_7 = arith.constant 0 : index
    %14 = vector.load %arg3[%c1_6, %c0_7] : memref<16x128xf32, #tpu.memory_space<vmem>>, vector<1x128xf32>
    %15 = vector.shape_cast %14 : vector<1x128xf32> to vector<128xf32>
    %16 = vector.shape_cast %15 : vector<128xf32> to vector<1x128xf32>
    %17 = vector.broadcast %16 : vector<1x128xf32> to vector<8x128xf32>
    %18 = arith.addf %0, %17 : vector<8x128xf32>
    %19 = math.absf %18 : vector<8x128xf32>
    %20 = vector.shape_cast %13 : vector<128xf32> to vector<1x128xf32>
    %21 = vector.broadcast %20 : vector<1x128xf32> to vector<8x128xf32>
    %22 = arith.mulf %21, %19 : vector<8x128xf32>
    %23 = arith.addf %11, %22 : vector<8x128xf32>
    %c2 = arith.constant 2 : index
    %c0_8 = arith.constant 0 : index
    %24 = vector.load %arg2[%c2, %c0_8] : memref<16x128xf32, #tpu.memory_space<vmem>>, vector<1x128xf32>
    %25 = vector.shape_cast %24 : vector<1x128xf32> to vector<128xf32>
    %c2_9 = arith.constant 2 : index
    %c0_10 = arith.constant 0 : index
    %26 = vector.load %arg3[%c2_9, %c0_10] : memref<16x128xf32, #tpu.memory_space<vmem>>, vector<1x128xf32>
    %27 = vector.shape_cast %26 : vector<1x128xf32> to vector<128xf32>
    %28 = vector.shape_cast %27 : vector<128xf32> to vector<1x128xf32>
    %29 = vector.broadcast %28 : vector<1x128xf32> to vector<8x128xf32>
    %30 = arith.addf %0, %29 : vector<8x128xf32>
    %31 = math.absf %30 : vector<8x128xf32>
    %32 = vector.shape_cast %25 : vector<128xf32> to vector<1x128xf32>
    %33 = vector.broadcast %32 : vector<1x128xf32> to vector<8x128xf32>
    %34 = arith.mulf %33, %31 : vector<8x128xf32>
    %35 = arith.addf %23, %34 : vector<8x128xf32>
    %c3 = arith.constant 3 : index
    %c0_11 = arith.constant 0 : index
    %36 = vector.load %arg2[%c3, %c0_11] : memref<16x128xf32, #tpu.memory_space<vmem>>, vector<1x128xf32>
    %37 = vector.shape_cast %36 : vector<1x128xf32> to vector<128xf32>
    %c3_12 = arith.constant 3 : index
    %c0_13 = arith.constant 0 : index
    %38 = vector.load %arg3[%c3_12, %c0_13] : memref<16x128xf32, #tpu.memory_space<vmem>>, vector<1x128xf32>
    %39 = vector.shape_cast %38 : vector<1x128xf32> to vector<128xf32>
    %40 = vector.shape_cast %39 : vector<128xf32> to vector<1x128xf32>
    %41 = vector.broadcast %40 : vector<1x128xf32> to vector<8x128xf32>
    %42 = arith.addf %0, %41 : vector<8x128xf32>
    %43 = math.absf %42 : vector<8x128xf32>
    %44 = vector.shape_cast %37 : vector<128xf32> to vector<1x128xf32>
    %45 = vector.broadcast %44 : vector<1x128xf32> to vector<8x128xf32>
    %46 = arith.mulf %45, %43 : vector<8x128xf32>
    %47 = arith.addf %35, %46 : vector<8x128xf32>
    %c4 = arith.constant 4 : index
    %c0_14 = arith.constant 0 : index
    %48 = vector.load %arg2[%c4, %c0_14] : memref<16x128xf32, #tpu.memory_space<vmem>>, vector<1x128xf32>
    %49 = vector.shape_cast %48 : vector<1x128xf32> to vector<128xf32>
    %c4_15 = arith.constant 4 : index
    %c0_16 = arith.constant 0 : index
    %50 = vector.load %arg3[%c4_15, %c0_16] : memref<16x128xf32, #tpu.memory_space<vmem>>, vector<1x128xf32>
    %51 = vector.shape_cast %50 : vector<1x128xf32> to vector<128xf32>
    %52 = vector.shape_cast %51 : vector<128xf32> to vector<1x128xf32>
    %53 = vector.broadcast %52 : vector<1x128xf32> to vector<8x128xf32>
    %54 = arith.addf %0, %53 : vector<8x128xf32>
    %55 = math.absf %54 : vector<8x128xf32>
    %56 = vector.shape_cast %49 : vector<128xf32> to vector<1x128xf32>
    %57 = vector.broadcast %56 : vector<1x128xf32> to vector<8x128xf32>
    %58 = arith.mulf %57, %55 : vector<8x128xf32>
    %59 = arith.addf %47, %58 : vector<8x128xf32>
    %c5 = arith.constant 5 : index
    %c0_17 = arith.constant 0 : index
    %60 = vector.load %arg2[%c5, %c0_17] : memref<16x128xf32, #tpu.memory_space<vmem>>, vector<1x128xf32>
    %61 = vector.shape_cast %60 : vector<1x128xf32> to vector<128xf32>
    %c5_18 = arith.constant 5 : index
    %c0_19 = arith.constant 0 : index
    %62 = vector.load %arg3[%c5_18, %c0_19] : memref<16x128xf32, #tpu.memory_space<vmem>>, vector<1x128xf32>
    %63 = vector.shape_cast %62 : vector<1x128xf32> to vector<128xf32>
    %64 = vector.shape_cast %63 : vector<128xf32> to vector<1x128xf32>
    %65 = vector.broadcast %64 : vector<1x128xf32> to vector<8x128xf32>
    %66 = arith.addf %0, %65 : vector<8x128xf32>
    %67 = math.absf %66 : vector<8x128xf32>
    %68 = vector.shape_cast %61 : vector<128xf32> to vector<1x128xf32>
    %69 = vector.broadcast %68 : vector<1x128xf32> to vector<8x128xf32>
    %70 = arith.mulf %69, %67 : vector<8x128xf32>
    %71 = arith.addf %59, %70 : vector<8x128xf32>
    %c6 = arith.constant 6 : index
    %c0_20 = arith.constant 0 : index
    %72 = vector.load %arg2[%c6, %c0_20] : memref<16x128xf32, #tpu.memory_space<vmem>>, vector<1x128xf32>
    %73 = vector.shape_cast %72 : vector<1x128xf32> to vector<128xf32>
    %c6_21 = arith.constant 6 : index
    %c0_22 = arith.constant 0 : index
    %74 = vector.load %arg3[%c6_21, %c0_22] : memref<16x128xf32, #tpu.memory_space<vmem>>, vector<1x128xf32>
    %75 = vector.shape_cast %74 : vector<1x128xf32> to vector<128xf32>
    %76 = vector.shape_cast %75 : vector<128xf32> to vector<1x128xf32>
    %77 = vector.broadcast %76 : vector<1x128xf32> to vector<8x128xf32>
    %78 = arith.addf %0, %77 : vector<8x128xf32>
    %79 = math.absf %78 : vector<8x128xf32>
    %80 = vector.shape_cast %73 : vector<128xf32> to vector<1x128xf32>
    %81 = vector.broadcast %80 : vector<1x128xf32> to vector<8x128xf32>
    %82 = arith.mulf %81, %79 : vector<8x128xf32>
    %83 = arith.addf %71, %82 : vector<8x128xf32>
    %c7 = arith.constant 7 : index
    %c0_23 = arith.constant 0 : index
    %84 = vector.load %arg2[%c7, %c0_23] : memref<16x128xf32, #tpu.memory_space<vmem>>, vector<1x128xf32>
    %85 = vector.shape_cast %84 : vector<1x128xf32> to vector<128xf32>
    %c7_24 = arith.constant 7 : index
    %c0_25 = arith.constant 0 : index
    %86 = vector.load %arg3[%c7_24, %c0_25] : memref<16x128xf32, #tpu.memory_space<vmem>>, vector<1x128xf32>
    %87 = vector.shape_cast %86 : vector<1x128xf32> to vector<128xf32>
    %88 = vector.shape_cast %87 : vector<128xf32> to vector<1x128xf32>
    %89 = vector.broadcast %88 : vector<1x128xf32> to vector<8x128xf32>
    %90 = arith.addf %0, %89 : vector<8x128xf32>
    %91 = math.absf %90 : vector<8x128xf32>
    %92 = vector.shape_cast %85 : vector<128xf32> to vector<1x128xf32>
    %93 = vector.broadcast %92 : vector<1x128xf32> to vector<8x128xf32>
    %94 = arith.mulf %93, %91 : vector<8x128xf32>
    %95 = arith.addf %83, %94 : vector<8x128xf32>
    %c8 = arith.constant 8 : index
    %c0_26 = arith.constant 0 : index
    %96 = vector.load %arg2[%c8, %c0_26] : memref<16x128xf32, #tpu.memory_space<vmem>>, vector<1x128xf32>
    %97 = vector.shape_cast %96 : vector<1x128xf32> to vector<128xf32>
    %c8_27 = arith.constant 8 : index
    %c0_28 = arith.constant 0 : index
    %98 = vector.load %arg3[%c8_27, %c0_28] : memref<16x128xf32, #tpu.memory_space<vmem>>, vector<1x128xf32>
    %99 = vector.shape_cast %98 : vector<1x128xf32> to vector<128xf32>
    %100 = vector.shape_cast %99 : vector<128xf32> to vector<1x128xf32>
    %101 = vector.broadcast %100 : vector<1x128xf32> to vector<8x128xf32>
    %102 = arith.addf %0, %101 : vector<8x128xf32>
    %103 = math.absf %102 : vector<8x128xf32>
    %104 = vector.shape_cast %97 : vector<128xf32> to vector<1x128xf32>
    %105 = vector.broadcast %104 : vector<1x128xf32> to vector<8x128xf32>
    %106 = arith.mulf %105, %103 : vector<8x128xf32>
    %107 = arith.addf %95, %106 : vector<8x128xf32>
    %c9 = arith.constant 9 : index
    %c0_29 = arith.constant 0 : index
    %108 = vector.load %arg2[%c9, %c0_29] : memref<16x128xf32, #tpu.memory_space<vmem>>, vector<1x128xf32>
    %109 = vector.shape_cast %108 : vector<1x128xf32> to vector<128xf32>
    %c9_30 = arith.constant 9 : index
    %c0_31 = arith.constant 0 : index
    %110 = vector.load %arg3[%c9_30, %c0_31] : memref<16x128xf32, #tpu.memory_space<vmem>>, vector<1x128xf32>
    %111 = vector.shape_cast %110 : vector<1x128xf32> to vector<128xf32>
    %112 = vector.shape_cast %111 : vector<128xf32> to vector<1x128xf32>
    %113 = vector.broadcast %112 : vector<1x128xf32> to vector<8x128xf32>
    %114 = arith.addf %0, %113 : vector<8x128xf32>
    %115 = math.absf %114 : vector<8x128xf32>
    %116 = vector.shape_cast %109 : vector<128xf32> to vector<1x128xf32>
    %117 = vector.broadcast %116 : vector<1x128xf32> to vector<8x128xf32>
    %118 = arith.mulf %117, %115 : vector<8x128xf32>
    %119 = arith.addf %107, %118 : vector<8x128xf32>
    %c10 = arith.constant 10 : index
    %c0_32 = arith.constant 0 : index
    %120 = vector.load %arg2[%c10, %c0_32] : memref<16x128xf32, #tpu.memory_space<vmem>>, vector<1x128xf32>
    %121 = vector.shape_cast %120 : vector<1x128xf32> to vector<128xf32>
    %c10_33 = arith.constant 10 : index
    %c0_34 = arith.constant 0 : index
    %122 = vector.load %arg3[%c10_33, %c0_34] : memref<16x128xf32, #tpu.memory_space<vmem>>, vector<1x128xf32>
    %123 = vector.shape_cast %122 : vector<1x128xf32> to vector<128xf32>
    %124 = vector.shape_cast %123 : vector<128xf32> to vector<1x128xf32>
    %125 = vector.broadcast %124 : vector<1x128xf32> to vector<8x128xf32>
    %126 = arith.addf %0, %125 : vector<8x128xf32>
    %127 = math.absf %126 : vector<8x128xf32>
    %128 = vector.shape_cast %121 : vector<128xf32> to vector<1x128xf32>
    %129 = vector.broadcast %128 : vector<1x128xf32> to vector<8x128xf32>
    %130 = arith.mulf %129, %127 : vector<8x128xf32>
    %131 = arith.addf %119, %130 : vector<8x128xf32>
    %c11 = arith.constant 11 : index
    %c0_35 = arith.constant 0 : index
    %132 = vector.load %arg2[%c11, %c0_35] : memref<16x128xf32, #tpu.memory_space<vmem>>, vector<1x128xf32>
    %133 = vector.shape_cast %132 : vector<1x128xf32> to vector<128xf32>
    %c11_36 = arith.constant 11 : index
    %c0_37 = arith.constant 0 : index
    %134 = vector.load %arg3[%c11_36, %c0_37] : memref<16x128xf32, #tpu.memory_space<vmem>>, vector<1x128xf32>
    %135 = vector.shape_cast %134 : vector<1x128xf32> to vector<128xf32>
    %136 = vector.shape_cast %135 : vector<128xf32> to vector<1x128xf32>
    %137 = vector.broadcast %136 : vector<1x128xf32> to vector<8x128xf32>
    %138 = arith.addf %0, %137 : vector<8x128xf32>
    %139 = math.absf %138 : vector<8x128xf32>
    %140 = vector.shape_cast %133 : vector<128xf32> to vector<1x128xf32>
    %141 = vector.broadcast %140 : vector<1x128xf32> to vector<8x128xf32>
    %142 = arith.mulf %141, %139 : vector<8x128xf32>
    %143 = arith.addf %131, %142 : vector<8x128xf32>
    %c12 = arith.constant 12 : index
    %c0_38 = arith.constant 0 : index
    %144 = vector.load %arg2[%c12, %c0_38] : memref<16x128xf32, #tpu.memory_space<vmem>>, vector<1x128xf32>
    %145 = vector.shape_cast %144 : vector<1x128xf32> to vector<128xf32>
    %c12_39 = arith.constant 12 : index
    %c0_40 = arith.constant 0 : index
    %146 = vector.load %arg3[%c12_39, %c0_40] : memref<16x128xf32, #tpu.memory_space<vmem>>, vector<1x128xf32>
    %147 = vector.shape_cast %146 : vector<1x128xf32> to vector<128xf32>
    %148 = vector.shape_cast %147 : vector<128xf32> to vector<1x128xf32>
    %149 = vector.broadcast %148 : vector<1x128xf32> to vector<8x128xf32>
    %150 = arith.addf %0, %149 : vector<8x128xf32>
    %151 = math.absf %150 : vector<8x128xf32>
    %152 = vector.shape_cast %145 : vector<128xf32> to vector<1x128xf32>
    %153 = vector.broadcast %152 : vector<1x128xf32> to vector<8x128xf32>
    %154 = arith.mulf %153, %151 : vector<8x128xf32>
    %155 = arith.addf %143, %154 : vector<8x128xf32>
    %c13 = arith.constant 13 : index
    %c0_41 = arith.constant 0 : index
    %156 = vector.load %arg2[%c13, %c0_41] : memref<16x128xf32, #tpu.memory_space<vmem>>, vector<1x128xf32>
    %157 = vector.shape_cast %156 : vector<1x128xf32> to vector<128xf32>
    %c13_42 = arith.constant 13 : index
    %c0_43 = arith.constant 0 : index
    %158 = vector.load %arg3[%c13_42, %c0_43] : memref<16x128xf32, #tpu.memory_space<vmem>>, vector<1x128xf32>
    %159 = vector.shape_cast %158 : vector<1x128xf32> to vector<128xf32>
    %160 = vector.shape_cast %159 : vector<128xf32> to vector<1x128xf32>
    %161 = vector.broadcast %160 : vector<1x128xf32> to vector<8x128xf32>
    %162 = arith.addf %0, %161 : vector<8x128xf32>
    %163 = math.absf %162 : vector<8x128xf32>
    %164 = vector.shape_cast %157 : vector<128xf32> to vector<1x128xf32>
    %165 = vector.broadcast %164 : vector<1x128xf32> to vector<8x128xf32>
    %166 = arith.mulf %165, %163 : vector<8x128xf32>
    %167 = arith.addf %155, %166 : vector<8x128xf32>
    %c14 = arith.constant 14 : index
    %c0_44 = arith.constant 0 : index
    %168 = vector.load %arg2[%c14, %c0_44] : memref<16x128xf32, #tpu.memory_space<vmem>>, vector<1x128xf32>
    %169 = vector.shape_cast %168 : vector<1x128xf32> to vector<128xf32>
    %c14_45 = arith.constant 14 : index
    %c0_46 = arith.constant 0 : index
    %170 = vector.load %arg3[%c14_45, %c0_46] : memref<16x128xf32, #tpu.memory_space<vmem>>, vector<1x128xf32>
    %171 = vector.shape_cast %170 : vector<1x128xf32> to vector<128xf32>
    %172 = vector.shape_cast %171 : vector<128xf32> to vector<1x128xf32>
    %173 = vector.broadcast %172 : vector<1x128xf32> to vector<8x128xf32>
    %174 = arith.addf %0, %173 : vector<8x128xf32>
    %175 = math.absf %174 : vector<8x128xf32>
    %176 = vector.shape_cast %169 : vector<128xf32> to vector<1x128xf32>
    %177 = vector.broadcast %176 : vector<1x128xf32> to vector<8x128xf32>
    %178 = arith.mulf %177, %175 : vector<8x128xf32>
    %179 = arith.addf %167, %178 : vector<8x128xf32>
    %c15 = arith.constant 15 : index
    %c0_47 = arith.constant 0 : index
    %180 = vector.load %arg2[%c15, %c0_47] : memref<16x128xf32, #tpu.memory_space<vmem>>, vector<1x128xf32>
    %181 = vector.shape_cast %180 : vector<1x128xf32> to vector<128xf32>
    %c15_48 = arith.constant 15 : index
    %c0_49 = arith.constant 0 : index
    %182 = vector.load %arg3[%c15_48, %c0_49] : memref<16x128xf32, #tpu.memory_space<vmem>>, vector<1x128xf32>
    %183 = vector.shape_cast %182 : vector<1x128xf32> to vector<128xf32>
    %184 = vector.shape_cast %183 : vector<128xf32> to vector<1x128xf32>
    %185 = vector.broadcast %184 : vector<1x128xf32> to vector<8x128xf32>
    %186 = arith.addf %0, %185 : vector<8x128xf32>
    %187 = math.absf %186 : vector<8x128xf32>
    %188 = vector.shape_cast %181 : vector<128xf32> to vector<1x128xf32>
    %189 = vector.broadcast %188 : vector<1x128xf32> to vector<8x128xf32>
    %190 = arith.mulf %189, %187 : vector<8x128xf32>
    %191 = arith.addf %179, %190 : vector<8x128xf32>
    %c0_50 = arith.constant 0 : index
    %192 = memref.load %arg1[%c0_50] : memref<2xf32, #tpu.memory_space<smem>>
    %193 = vector.broadcast %192 : f32 to vector<8x128xf32>
    %194 = arith.mulf %193, %0 : vector<8x128xf32>
    %c1_51 = arith.constant 1 : index
    %195 = memref.load %arg1[%c1_51] : memref<2xf32, #tpu.memory_space<smem>>
    %196 = vector.broadcast %195 : f32 to vector<8x128xf32>
    %197 = arith.addf %191, %196 : vector<8x128xf32>
    %198 = arith.addf %194, %197 : vector<8x128xf32>
    %cst = arith.constant 0.000000e+00 : f32
    %199 = vector.broadcast %cst : f32 to vector<8x128xf32>
    %200 = arith.subf %199, %198 : vector<8x128xf32>
    %201 = math.exp %200 : vector<8x128xf32>
    %cst_52 = arith.constant 1.000000e+00 : f32
    %202 = vector.broadcast %cst_52 : f32 to vector<8x128xf32>
    %203 = arith.addf %202, %201 : vector<8x128xf32>
    %204 = tpu.reciprocal %203 : vector<8x128xf32> -> vector<8x128xf32>
    %c0_53 = arith.constant 0 : index
    %c0_54 = arith.constant 0 : index
    %205 = vector.load %arg5[%c0_53, %c0_54] : memref<8x128xf32, #tpu.memory_space<vmem>>, vector<8x128xf32>
    tpu.vector_store %arg5[%c0_53, %c0_54], %204 {strides = array<i32>} : memref<8x128xf32, #tpu.memory_space<vmem>>, vector<8x128xf32>,
    return
  }
  func.func @transform_0(%arg0: i32) -> i32 {
    %c0_i32 = arith.constant 0 : i32
    %c0_i32_0 = arith.constant 0 : i32
    return %c0_i32 : i32
  }
  func.func @transform_1(%arg0: i32) -> (i32, i32) {
    %c0_i32 = arith.constant 0 : i32
    %c0_i32_0 = arith.constant 0 : i32
    %c0_i32_1 = arith.constant 0 : i32
    return %c0_i32, %c0_i32_0 : i32, i32
  }
  func.func @transform_2(%arg0: i32) -> (i32, i32) {
    %c0_i32 = arith.constant 0 : i32
    %c0_i32_0 = arith.constant 0 : i32
    %c0_i32_1 = arith.constant 0 : i32
    return %c0_i32, %c0_i32_0 : i32, i32
  }
  func.func @transform_3(%arg0: i32) -> (i32, i32) {
    %c0_i32 = arith.constant 0 : i32
    %c0_i32_0 = arith.constant 0 : i32
    return %arg0, %c0_i32 : i32, i32
  }
  func.func @transform_4(%arg0: i32) -> (i32, i32) {
    %c0_i32 = arith.constant 0 : i32
    %c0_i32_0 = arith.constant 0 : i32
    return %arg0, %c0_i32 : i32, i32
  }
}

</mosaic_0001>

<bundles_post_ra>
// kernel: tpu_custom_call.1
= control target key start
LH: loop header
LB: loop body
LE: loop exit
PB: predicated region body
PF: predicated region fallthrough
CT: control target
= control target key end

     0   :  { %9 = vsyncpa [#allocation5], 0  ;;  %s539_s0 = inlined_call_operand.hbm [shape: f32[2], index: 0, kind: input, shape index: {}]   ;;  %s540_s1 = inlined_call_operand.hbm [shape: f32[16,128], index: 1, kind: input, shape index: {}]   ;;  %s541_s2 = inlined_call_operand.hbm [shape: f32[16,128], index: 2, kind: input, shape index: {}]   ;;  %s542_s3 = inlined_call_operand.vmem [shape: f32[8,128], index: 3, kind: input, shape index: {}]   ;;  %s543_s4 = inlined_call_operand.hbm [shape: f32[8,128], index: 4, kind: output, shape index: {}]  }
   0x1   :  { %10 = vsyncpa [#allocation3], 0 }
   0x2   :  { %11 = vsyncpa [#allocation8], 0 }
   0x3   :  { %12 = vsyncpa [#allocation4], 0  ;;  %s354_s17 = scalar_lea.hbm %s539_s0, 16 }
   0x4   :  { %p355_p0 = scmp.ne.s32.totalorder %s539_s0, %s354_s17  ;;  %p358_p1 = scmp.lt.u32.totalorder %s354_s17, %s539_s0 }
   0x6   :  { %p360_p2 = pnand %p358_p1, %p355_p0 }
   0x8   :  { %363 = shalt.err (!%p360_p2)
}
   0x9   :  { %s438_s22 = smov [#allocation2]   ;;  %s439_s25 = smov [#allocation6]  }
   0xa   :  { %20 = dma.hbm_to_smem %s539_s0, 16, %s438_s22, [#allocation5]  }
   0xb   :  { %s26_s26 = sshll.u32 %s439_s25, 4  ;;  %s364_s29 = scalar_lea.hbm %s540_s1, 256  ;;  %s27_s26 = int_to_ptr.vmem [resolvable:$true] %s26_s26 }
   0xc   :  { %p365_p3 = scmp.ne.s32.totalorder %s540_s1, %s364_s29  ;;  %p368_p4 = scmp.lt.u32.totalorder %s364_s29, %s540_s1 }
   0xe   :  { %p370_p5 = pnand %p368_p4, %p365_p3 }
  0x10   :  { %373 = shalt.err (!%p370_p5)
}
  0x11   :  { %s374_s8 = scalar_lea.vmem %s27_s26, 256  ;;  %p379_p7 = scmp.lt.s32.totalorder %s27_s26, %s27_s26 }
  0x12   :  { %p375_p6 = scmp.ne.s32.totalorder %s27_s26, %s374_s8  ;;  %p380_p8 = scmp.lt.s32.totalorder %s374_s8, %s374_s8 }
  0x14   :  { %p381_p9 = por %p380_p8, %p379_p7 }
  0x16   :  { %p382_p10 = pnand %p381_p9, %p375_p6 }
  0x18   :  { %385 = shalt.err (!%p382_p10)
}
  0x19   :  { %s440_s0 = smov 128   ;;  %s441_s9 = smov 8  }
  0x1a   :  { %32 = dma.hbm_to_vmem [thread:$0]  %s540_s1, 256, %s27_s26, [#allocation3], %s440_s0, %s440_s0, %s441_s9  }
  0x1b   :  { %s442_s12 = smov [#allocation7]   ;;  %s386_s16 = scalar_lea.hbm %s541_s2, 256 }
  0x1c   :  { %s38_s13 = sshll.u32 %s442_s12, 4  ;;  %p387_p11 = scmp.ne.s32.totalorder %s541_s2, %s386_s16  ;;  %s39_s13 = int_to_ptr.vmem [resolvable:$true] %s38_s13 }
  0x1d   :  { %p390_p12 = scmp.lt.u32.totalorder %s386_s16, %s541_s2 }
  0x1f   :  { %p392_p13 = pnand %p390_p12, %p387_p11 }
  0x21   :  { %395 = shalt.err (!%p392_p13)
}
  0x22   :  { %s396_s21 = scalar_lea.vmem %s39_s13, 256  ;;  %p401_p1 = scmp.lt.s32.totalorder %s39_s13, %s39_s13 }
  0x23   :  { %p397_p0 = scmp.ne.s32.totalorder %s39_s13, %s396_s21  ;;  %p402_p2 = scmp.lt.s32.totalorder %s396_s21, %s396_s21 }
  0x25   :  { %p403_p3 = por %p402_p2, %p401_p1 }
  0x27   :  { %p404_p4 = pnand %p403_p3, %p397_p0 }
  0x29   :  { %407 = shalt.err (!%p404_p4)
}
  0x2a   :  { %44 = dma.hbm_to_vmem [thread:$0]  %s541_s2, 256, %s39_s13, [#allocation8], %s440_s0, %s440_s0, %s441_s9  }
  0x2b   :  { %430 = dma.done.wait [#allocation5], 16  }
  0x2c   :  { %431 = vsyncadd [#allocation5], 4294967280 }
  0x2d   :  { %432 = dma.done.wait [#allocation3], 256  }
  0x2e   :  { %433 = vsyncadd [#allocation3], 4294967040 }
  0x2f   :  { %434 = dma.done.wait [#allocation8], 256  }
  0x30   :  { %435 = vsyncadd [#allocation8], 4294967040 }
  0x31   :  { %56 = sfence }
  0x32   :  { %v508_v0 = vld [vmem:[%s542_s3] sm:$0xff]  ;;  %v311_v1 = vld [vmem:[#allocation7] ss:$0 sm:$0xff]  ;;  %v313_v3 = vld [vmem:[#allocation7 + $0x1] ss:$0 sm:$0xff]  ;;  %s281_s2 = sld [smem:[#allocation2]] }
  0x33   :  { %v64_v2 = vadd.f32 %v311_v1, %v508_v0  ;;  %v312_v4 = vld [vmem:[#allocation6] ss:$0 sm:$0xff]  ;;  %v77_v5 = vadd.f32 %v313_v3, %v508_v0  ;;  %v315_v6 = vld [vmem:[#allocation7 + $0x2] ss:$0 sm:$0xff]  ;;  %v317_v7 = vld [vmem:[#allocation7 + $0x3] ss:$0 sm:$0xff] }
  0x34   :  { %v314_v9 = vld [vmem:[#allocation6 + $0x1] ss:$0 sm:$0xff]  ;;  %v91_v10 = vadd.f32 %v315_v6, %v508_v0  ;;  %v105_v11 = vadd.f32 %v317_v7, %v508_v0  ;;  %v319_v12 = vld [vmem:[#allocation7 + $0x4] ss:$0 sm:$0xff]  ;;  %v316_v14 = vld [vmem:[#allocation6 + $0x2] ss:$0 sm:$0xff] }
  0x35   :  { %v65_v8 = vand.u32 2147483647, %v64_v2  ;;  %v78_v13 = vand.u32 2147483647, %v77_v5  ;;  %v119_v15 = vadd.f32 %v319_v12, %v508_v0  ;;  %v321_v16 = vld [vmem:[#allocation7 + $0x5] ss:$0 sm:$0xff] }
  0x36   :  { %v92_v18 = vand.u32 2147483647, %v91_v10  ;;  %v318_v19 = vld [vmem:[#allocation6 + $0x3] ss:$0 sm:$0xff]  ;;  %v106_v20 = vand.u32 2147483647, %v105_v11  ;;  %v133_v21 = vadd.f32 %v321_v16, %v508_v0 }
  0x37   :  { %v70_v17 = vmul.f32 %v312_v4, %v65_v8  ;;  %v83_v22 = vmul.f32 %v314_v9, %v78_v13  ;;  %v120_v23 = vand.u32 2147483647, %v119_v15  ;;  %v323_v24 = vld [vmem:[#allocation7 + $0x6] ss:$0 sm:$0xff]  ;;  %v320_v26 = vld [vmem:[#allocation6 + $0x4] ss:$0 sm:$0xff] }
  0x38   :  { %v97_v25 = vmul.f32 %v316_v14, %v92_v18  ;;  %v147_v27 = vadd.f32 %v323_v24, %v508_v0  ;;  %v325_v28 = vld [vmem:[#allocation7 + $0x7] ss:$0 sm:$0xff]  ;;  %v111_v30 = vmul.f32 %v318_v19, %v106_v20  ;;  %v134_v31 = vand.u32 2147483647, %v133_v21  ;;  %v327_v33 = vld [vmem:[#allocation7 + $0x8] ss:$0 sm:$0xff] }
  0x39   :  { %v84_v29 = vadd.f32 %v83_v22, %v70_v17  ;;  %v161_v32 = vadd.f32 %v325_v28, %v508_v0  ;;  %v322_v34 = vld [vmem:[#allocation6 + $0x5] ss:$0 sm:$0xff]  ;;  %v329_v35 = vld [vmem:[#allocation7 + $0x9] ss:$0 sm:$0xff]  ;;  %v125_v37 = vmul.f32 %v320_v26, %v120_v23  ;;  %v175_v39 = vadd.f32 %v327_v33, %v508_v0  ;;  %v324_v40 = vld [vmem:[#allocation6 + $0x6] ss:$0 sm:$0xff] }
  0x3a   :  { %v148_v38 = vand.u32 2147483647, %v147_v27  ;;  %v331_v41 = vld [vmem:[#allocation7 + $0xa] ss:$0 sm:$0xff]  ;;  %v139_v43 = vmul.f32 %v322_v34, %v134_v31  ;;  %v189_v45 = vadd.f32 %v329_v35, %v508_v0  ;;  %v326_v46 = vld [vmem:[#allocation6 + $0x7] ss:$0 sm:$0xff]  ;;  %v282_v31 = vstv %s281_s2 }
  0x3b   :  { %v98_v36 = vadd.f32 %v97_v25, %v84_v29  ;;  %v162_v44 = vand.u32 2147483647, %v161_v32  ;;  %v333_v47 = vld [vmem:[#allocation7 + $0xb] ss:$0 sm:$0xff]  ;;  %v176_v50 = vand.u32 2147483647, %v175_v39  ;;  %v203_v51 = vadd.f32 %v331_v41, %v508_v0 }
  0x3c   :  { %v153_v49 = vmul.f32 %v324_v40, %v148_v38  ;;  %v328_v52 = vld [vmem:[#allocation6 + $0x8] ss:$0 sm:$0xff]  ;;  %v335_v53 = vld [vmem:[#allocation7 + $0xc] ss:$0 sm:$0xff]  ;;  %v190_v56 = vand.u32 2147483647, %v189_v45  ;;  %v217_v57 = vadd.f32 %v333_v47, %v508_v0  ;;  %v283_v35 = vmul.f32 %v282_v31, %v508_v0 }
  0x3d   :  { %v112_v42 = vadd.f32 %v111_v30, %v98_v36  ;;  %v167_v55 = vmul.f32 %v326_v46, %v162_v44  ;;  %v330_v58 = vld [vmem:[#allocation6 + $0x9] ss:$0 sm:$0xff]  ;;  %v337_v59 = vld [vmem:[#allocation7 + $0xd] ss:$0 sm:$0xff]  ;;  %v181_v61 = vmul.f32 %v328_v52, %v176_v50  ;;  %v204_v62 = vand.u32 2147483647, %v203_v51 }
  0x3e   :  { %v231_v63 = vadd.f32 %v335_v53, %v508_v0  ;;  %v332_v1 = vld [vmem:[#allocation6 + $0xa] ss:$0 sm:$0xff]  ;;  %v339_v2 = vld [vmem:[#allocation7 + $0xe] ss:$0 sm:$0xff]  ;;  %v195_v4 = vmul.f32 %v330_v58, %v190_v56  ;;  %v218_v5 = vand.u32 2147483647, %v217_v57  ;;  %v245_v6 = vadd.f32 %v337_v59, %v508_v0 }
  0x3f   :  { %v126_v48 = vadd.f32 %v125_v37, %v112_v42  ;;  %v334_v7 = vld [vmem:[#allocation6 + $0xb] ss:$0 sm:$0xff]  ;;  %v341_v8 = vld [vmem:[#allocation7 + $0xf] ss:$0 sm:$0xff]  ;;  %v209_v10 = vmul.f32 %v332_v1, %v204_v62  ;;  %v259_v12 = vadd.f32 %v339_v2, %v508_v0  ;;  %v336_v13 = vld [vmem:[#allocation6 + $0xc] ss:$0 sm:$0xff] }
  0x40   :  { %v232_v11 = vand.u32 2147483647, %v231_v63  ;;  %v223_v15 = vmul.f32 %v334_v7, %v218_v5  ;;  %v246_v16 = vand.u32 2147483647, %v245_v6  ;;  %v273_v17 = vadd.f32 %v341_v8, %v508_v0  ;;  %v338_v18 = vld [vmem:[#allocation6 + $0xd] ss:$0 sm:$0xff] }
  0x41   :  { %v140_v54 = vadd.f32 %v139_v43, %v126_v48  ;;  %v260_v21 = vand.u32 2147483647, %v259_v12  ;;  %v340_v22 = vld [vmem:[#allocation6 + $0xe] ss:$0 sm:$0xff]  ;;  %s343_s3 = sld [smem:[#allocation2 + $0x1]]  ;;  %s443_s25 = smov [#allocation9]  }
  0x42   :  { %v237_v20 = vmul.f32 %v336_v13, %v232_v11  ;;  %v251_v24 = vmul.f32 %v338_v18, %v246_v16  ;;  %v274_v25 = vand.u32 2147483647, %v273_v17  ;;  %v342_v26 = vld [vmem:[#allocation6 + $0xf] ss:$0 sm:$0xff]  ;;  %s300_s26 = sshll.u32 %s443_s25, 4  ;;  %s301_s26 = int_to_ptr.vmem [resolvable:$true] %s300_s26 }
  0x43   :  { %v154_v60 = vadd.f32 %v153_v49, %v140_v54  ;;  %v265_v28 = vmul.f32 %v340_v22, %v260_v21  ;;  %s408_s27 = scalar_lea.vmem %s301_s26, 128  ;;  %p413_p6 = scmp.lt.s32.totalorder %s301_s26, %s301_s26 }
  0x44   :  { %v279_v30 = vmul.f32 %v342_v26, %v274_v25  ;;  %p409_p5 = scmp.ne.s32.totalorder %s301_s26, %s408_s27  ;;  %p414_p7 = scmp.lt.s32.totalorder %s408_s27, %s408_s27 }
  0x45   :  { %v168_v3 = vadd.f32 %v167_v55, %v154_v60 }
  0x46   :  { %p415_p8 = por %p414_p7, %p413_p6 }
  0x47   :  { %v182_v9 = vadd.f32 %v181_v61, %v168_v3  ;;  %v285_v33 = vstv %s343_s3 }
  0x48   :  { %p416_p9 = pnand %p415_p8, %p409_p5 }
  0x49   :  { %v196_v14 = vadd.f32 %v195_v4, %v182_v9 }
  0x4b   :  { %v210_v19 = vadd.f32 %v209_v10, %v196_v14 }
  0x4d   :  { %v224_v23 = vadd.f32 %v223_v15, %v210_v19 }
  0x4f   :  { %v238_v27 = vadd.f32 %v237_v20, %v224_v23 }
  0x51   :  { %v252_v29 = vadd.f32 %v251_v24, %v238_v27 }
  0x53   :  { %v266_v32 = vadd.f32 %v265_v28, %v252_v29 }
  0x55   :  { %v280_v34 = vadd.f32 %v279_v30, %v266_v32 }
  0x57   :  { %v286_v36 = vadd.f32 %v285_v33, %v280_v34 }
  0x59   :  { %v287_v37 = vadd.f32 %v286_v36, %v283_v35 }
  0x5b   :  { %v288_v38 = vsub.f32 0.0, %v287_v37 }
  0x5d   :  { %v289_v39 = vmul.f32 1.442695, %v288_v38 }
  0x5f   :  { %350 = vpow2.f32 %v289_v39 }
  0x69   :  { %v351_v40 = vpop.eup %350 }
  0x6a   :  { %v291_v41 = vadd.f32 1.0, %v351_v40 }
  0x6c   :  { %352 = vrcp.f32 %v291_v41 }
  0x76   :  { %v353_v42 = vpop.eup %352 }
  0x77   :  { %293 = vst [vmem:[#allocation9] sm:$0xff] %v353_v42 }
  0x78   :  { %419 = shalt.err (!%p416_p9)
}
  0x79   :  { %s420_s30 = scalar_lea.hbm %s543_s4, 128 }
  0x7a   :  { %p421_p10 = scmp.ne.s32.totalorder %s543_s4, %s420_s30  ;;  %p424_p11 = scmp.lt.u32.totalorder %s420_s30, %s543_s4 }
  0x7c   :  { %p426_p12 = pnand %p424_p11, %p421_p10 }
  0x7e   :  { %429 = shalt.err (!%p426_p12)
}
  0x7f   :  { %303 = dma.vmem_to_hbm [thread:$0]  %s301_s26, 128, %s543_s4, [#allocation4]  }
  0x80   :  { %436 = dma.done.wait [#allocation4], 128  }
  0x81   :  { %437 = vsyncadd [#allocation4], 4294967168 }
  0x82   :  { %307 = vsyncpa [#allocation3], 1 }
  0x83   :  { %308 = vsyncpa [#allocation8], 1 }
  0x84   :  { %309 = vsyncpa [#allocation4], 1 }
  0x85   :  { %310 = vsyncpa [#allocation5], 1 }

</bundles_post_ra>
